<compile_context>
chip_gen: v5e
topology: v5e:2x2
jax: 0.10.0
libtpu: 0.0.40
codegen_flags: <defaults>
</compile_context>

<pallas_src>
import functools

import jax
import jax.numpy as jnp
import numpy as np
from jax import lax
from jax.experimental import pallas as pl
from jax.experimental.pallas import tpu as pltpu

LANES = 128  # TPU lane width; head outputs are padded to one full lane group.


# --------------------------- fused policy kernel ----------------------------
def _fused_policy_kernel(
    coef_ref,    # SMEM (4,) f32: [e_coef, v_coef, critic_bias, 1/B]
    h_ref,       # VMEM (TB, n_h)   f32
    na_ref,      # VMEM (TB, n_n)   i32 neighbor actions
    a_ref,       # VMEM (TB, 1)     i32 sampled actions
    adv_ref,     # VMEM (TB, 1)     f32 advantages
    r_ref,       # VMEM (TB, 1)     f32 returns
    wat_ref,     # VMEM (n_h, LANES) f32 actor W^T, zero-padded past n_a
    ba_ref,      # VMEM (1, LANES)   f32 actor bias, zero-padded past n_a
    wch_ref,     # VMEM (1, n_h)     f32 critic weights for h
    wcna_ref,    # VMEM (n_n, n_a)   f32 critic weights for each one-hot block
    heads_ref,   # VMEM (TB, LANES)  f32 out: lanes [0,n_a) logits, lane n_a = v
    loss_ref,    # VMEM (1, LANES)   f32 out: lanes 0/1/2 = policy/value/entropy
    acc_ref,     # SMEM (3,) f32 scratch: sum(lp*adv), sum(entropy), sum((r-v)^2)
    *,
    n_a,
    n_n,
):
    step = pl.program_id(0)

    @pl.when(step == 0)
    def _():
        acc_ref[0] = jnp.float32(0.0)
        acc_ref[1] = jnp.float32(0.0)
        acc_ref[2] = jnp.float32(0.0)

    h = h_ref[...]                                  # (TB, n_h)
    tb = h.shape[0]

    # ---- actor head: MXU matmul against lane-padded (n_h, 128) weights -----
    # TODO(synk): for large n_h on v5e/v6e, cast h / wat to bf16 here (keep
    # f32 accumulation) to use full MXU throughput; unnecessary at toy sizes.
    logits_pad = (
        jnp.dot(h, wat_ref[...], preferred_element_type=jnp.float32) + ba_ref[...]
    )                                               # (TB, 128), zeros past n_a

    # ---- critic head (output width 1): VPU multiply + lane reduce, no MXU --
    v = jnp.sum(h * wch_ref[...], axis=-1, keepdims=True)          # (TB, 1)
    iota_a = lax.broadcasted_iota(jnp.int32, (tb, n_a), 1)
    for k in range(n_n):                            # n_n is small & static
        oh_k = iota_a == na_ref[:, k : k + 1]       # one_hot(na[:, k], n_a)
        v = v + jnp.sum(
            jnp.where(oh_k, wcna_ref[k : k + 1, :], 0.0),
            axis=-1, keepdims=True,
        )
    v = v + coef_ref[2]                             # critic bias

    lane = lax.broadcasted_iota(jnp.int32, (tb, LANES), 1)
    valid = lane < n_a

    # ---- single lane-dense output slab: logits + value column --------------
    heads_ref[...] = logits_pad + jnp.where(lane == n_a, v, 0.0)

    # ---- per-block loss partial sums (log-softmax / entropy) ---------------
    neg_big = jnp.float32(-1e30)
    logits_m = jnp.where(valid, logits_pad, neg_big)
    m = jnp.max(logits_m, axis=-1, keepdims=True)
    z = jnp.where(valid, jnp.exp(logits_m - m), 0.0)
    s = jnp.sum(z, axis=-1, keepdims=True)
    probs = z * pl.reciprocal(s, approx=True)       # EUP reciprocal
    log_probs = jnp.where(valid, logits_m - m - jnp.log(s), 0.0)

    oh_a = (lane == a_ref[...]).astype(jnp.float32)
    lp_a = jnp.sum(log_probs * oh_a, axis=-1, keepdims=True)        # (TB, 1)
    entropy = -jnp.sum(probs * log_probs, axis=-1, keepdims=True)   # (TB, 1)

    acc_ref[0] = acc_ref[0] + jnp.sum(lp_a * adv_ref[...])
    acc_ref[1] = acc_ref[1] + jnp.sum(entropy)
    acc_ref[2] = acc_ref[2] + jnp.sum((r_ref[...] - v) ** 2)

    @pl.when(step == pl.num_programs(0) - 1)
    def _():
        e_coef = coef_ref[0]
        v_coef = coef_ref[1]
        inv_b = coef_ref[3]
        policy_loss = -acc_ref[0] * inv_b
        value_loss = acc_ref[2] * inv_b * v_coef
        entropy_loss = -acc_ref[1] * inv_b * e_coef
        out_lane = lax.broadcasted_iota(jnp.int32, (1, LANES), 1)
        loss_ref[...] = jnp.where(
            out_lane == 0,
            policy_loss,
            jnp.where(out_lane == 1, value_loss,
                      jnp.where(out_lane == 2, entropy_loss, 0.0)),
        )


# ----------------------- once-per-setup parameter prep ----------------------
def prepare_policy_params(Wa, ba, Wc, bc, n_a, n_n):
    """Hoisted transpose / pad / split of the Linear params (not per-step)."""
    n_h = Wa.shape[1]
    assert n_a + 1 <= LANES
    wat_pad = jnp.zeros((n_h, LANES), jnp.float32).at[:, :n_a].set(
        Wa.T.astype(jnp.float32))
    ba_pad = jnp.zeros((1, LANES), jnp.float32).at[:, :n_a].set(
        ba.astype(jnp.float32))
    wc = Wc.astype(jnp.float32).reshape(1, -1)
    wc_h = wc[:, :n_h]
    wc_na = wc[0, n_h: n_h + n_n * n_a].reshape(n_n, n_a)
    bc_scalar = jnp.asarray(bc, jnp.float32).reshape(())
    return wat_pad, ba_pad, wc_h, wc_na, bc_scalar


# ------------------------------ fused wrapper --------------------------------
def policy_heads_and_loss(h, na, As, Advs, Rs, params, *, n_a, e_coef, v_coef,
                          block_b=None):
    """Fused actor head + critic head (identical=True) + _run_loss.

    Returns (logits [B, n_a], vs [B], (policy_loss, value_loss, entropy_loss)).
    """
    wat_pad, ba_pad, wc_h, wc_na, bc = params
    B, n_h = h.shape
    n_n = na.shape[1]
    if block_b is None:
        # Batch tile: multiple of 8 sublanes; conservative so the double-
        # buffered input blocks stay far under v7x's 64 MiB VMEM.
        block_b = min(B, 512)
    assert B % block_b == 0 and block_b % 8 == 0
    grid = (B // block_b,)

    coef = jnp.stack([jnp.float32(e_coef), jnp.float32(v_coef), bc,
                      jnp.float32(1.0 / B)])

    kernel = functools.partial(_fused_policy_kernel, n_a=n_a, n_n=n_n)

    heads, losses = pl.pallas_call(
        kernel,
        out_shape=(
            jax.ShapeDtypeStruct((B, LANES), jnp.float32),
            jax.ShapeDtypeStruct((1, LANES), jnp.float32),
        ),
        grid=grid,
        in_specs=[
            pl.BlockSpec(memory_space=pltpu.MemorySpace.SMEM),       # coef
            pl.BlockSpec((block_b, n_h), lambda i: (i, 0)),          # h
            pl.BlockSpec((block_b, n_n), lambda i: (i, 0)),          # na
            pl.BlockSpec((block_b, 1), lambda i: (i, 0)),            # As
            pl.BlockSpec((block_b, 1), lambda i: (i, 0)),            # Advs
            pl.BlockSpec((block_b, 1), lambda i: (i, 0)),            # Rs
            pl.BlockSpec((n_h, LANES), lambda i: (0, 0)),            # actor W^T pad
            pl.BlockSpec((1, LANES), lambda i: (0, 0)),              # actor bias pad
            pl.BlockSpec((1, n_h), lambda i: (0, 0)),                # critic W (h part)
            pl.BlockSpec((n_n, n_a), lambda i: (0, 0)),              # critic W (one-hots)
        ],
        out_specs=(
            pl.BlockSpec((block_b, LANES), lambda i: (i, 0)),        # heads slab
            pl.BlockSpec((1, LANES), lambda i: (0, 0)),              # losses (resident)
        ),
        scratch_shapes=[pltpu.SMEM((3,), jnp.float32)],
        # Loss accumulator carries across batch tiles -> 'arbitrary'.
        # TODO(synk): on v7x, a 2-TC split would need per-core partial sums
        # combined in a second tiny reduction (batch axis 'parallel').
        compiler_params=pltpu.CompilerParams(
            dimension_semantics=("arbitrary",)),
    )(
        coef,
        h.astype(jnp.float32),
        na.astype(jnp.int32),
        As.astype(jnp.int32),
        Advs.astype(jnp.float32),
        Rs.astype(jnp.float32),
        wat_pad,
        ba_pad,
        wc_h,
        wc_na,
    )

    logits = heads[:, :n_a]
    vs = heads[:, n_a]
    return logits, vs, (losses[0, 0], losses[0, 1], losses[0, 2])


# TODO(synk): Policy.forward() is abstract (raises NotImplementedError), the
# tensorboard logging has no kernel equivalent, and only the identical=True
# critic branch (fixed n_a one-hots) is implemented; the non-identical
# na_dim_ls branch is not translated.


# -------------------------------- reference ---------------------------------
def _reference(h, Wa, ba, Wc, bc, na, As, Advs, Rs, n_a, e_coef, v_coef):
    logits = h @ Wa.T + ba
    oh = jax.nn.one_hot(na, n_a, dtype=jnp.float32).reshape(h.shape[0], -1)
    vs = (jnp.concatenate([h, oh], axis=1) @ Wc.T + bc)[:, 0]
    logp = jax.nn.log_softmax(logits, axis=-1)
    p = jnp.exp(logp)
    lp_a = jnp.take_along_axis(logp, As, axis=1)
    pol = -jnp.mean(lp_a * Advs)
    ent = -jnp.mean(-jnp.sum(p * logp, axis=-1)) * e_coef
    val = jnp.mean((Rs[:, 0] - vs) ** 2) * v_coef
    return logits, vs, (pol, val, ent)


if __name__ == "__main__":
    B, n_h, n_a, n_n = 16, 32, 6, 2
    e_coef, v_coef = 0.01, 0.5

    key = jax.random.PRNGKey(0)
    ks = jax.random.split(key, 8)
    # deterministic "fc"-style parameter init (synthetic, not a checkpoint)
    h = jax.random.normal(ks[0], (B, n_h), jnp.float32)
    Wa = 0.1 * jax.random.normal(ks[1], (n_a, n_h), jnp.float32)
    ba = jnp.zeros((n_a,), jnp.float32)
    Wc = 0.1 * jax.random.normal(ks[2], (1, n_h + n_a * n_n), jnp.float32)
    bc = jnp.zeros((1,), jnp.float32)

    na = jax.random.randint(ks[3], (B, n_n), 0, n_a, jnp.int32)
    As = jax.random.randint(ks[4], (B, 1), 0, n_a, jnp.int32)
    Advs = jax.random.normal(ks[5], (B, 1), jnp.float32)
    Rs = jax.random.normal(ks[6], (B, 1), jnp.float32)

    # Fused Pallas kernel (block_b=8 -> 2 grid steps, exercising the
    # tiled-batch loss accumulator path).
    params = prepare_policy_params(Wa, ba, Wc, bc, n_a, n_n)
    logits, vs, (pol, val, ent) = policy_heads_and_loss(
        h, na, As, Advs, Rs, params, n_a=n_a, e_coef=e_coef, v_coef=v_coef,
        block_b=8,
    )
    jax.block_until_ready((logits, vs, pol, val, ent))

    # pure-JAX reference check
    r_logits, r_vs, (r_pol, r_val, r_ent) = _reference(
        h, Wa, ba, Wc, bc, na, As, Advs, Rs, n_a, e_coef, v_coef
    )
    np.testing.assert_allclose(np.asarray(logits), np.asarray(r_logits), atol=1e-5)
    np.testing.assert_allclose(np.asarray(vs), np.asarray(r_vs), atol=1e-5)
    np.testing.assert_allclose(float(pol), float(r_pol), atol=5e-5)
    np.testing.assert_allclose(float(val), float(r_val), atol=5e-5)
    np.testing.assert_allclose(float(ent), float(r_ent), atol=5e-5)

    print("KERNEL_OK")
</pallas_src>

<mosaic_0001>
module attributes {stable_mosaic.version = 11 : i64} {
  func.func @_fused_policy_kernel(%arg0: i32, %arg1: memref<4xf32, #tpu.memory_space<smem>>, %arg2: memref<8x32xf32, #tpu.memory_space<vmem>>, %arg3: memref<8x2xi32, #tpu.memory_space<vmem>>, %arg4: memref<8x1xi32, #tpu.memory_space<vmem>>, %arg5: memref<8x1xf32, #tpu.memory_space<vmem>>, %arg6: memref<8x1xf32, #tpu.memory_space<vmem>>, %arg7: memref<32x128xf32, #tpu.memory_space<vmem>>, %arg8: memref<1x128xf32, #tpu.memory_space<vmem>>, %arg9: memref<1x32xf32, #tpu.memory_space<vmem>>, %arg10: memref<2x6xf32, #tpu.memory_space<vmem>>, %arg11: memref<8x128xf32, #tpu.memory_space<vmem>>, %arg12: memref<1x128xf32, #tpu.memory_space<vmem>>, %arg13: memref<3xf32, #tpu.memory_space<smem>>) attributes {dimension_semantics = [#tpu.dimension_semantics<arbitrary>], iteration_bounds = array<i64: 2>, scalar_prefetch = 0 : i64, scratch_operands = 1 : i64, tpu.core_type = #tpu.core_type<tc>, window_params = [{transform_indices = @transform_0, window_bounds = array<i64: 4>}, {transform_indices = @transform_1, window_bounds = array<i64: 8, 32>}, {transform_indices = @transform_2, window_bounds = array<i64: 8, 2>}, {transform_indices = @transform_3, window_bounds = array<i64: 8, 1>}, {transform_indices = @transform_4, window_bounds = array<i64: 8, 1>}, {transform_indices = @transform_5, window_bounds = array<i64: 8, 1>}, {pipeline_mode = #tpu.pipeline_mode<synchronous>, transform_indices = @transform_6, window_bounds = array<i64: 32, 128>}, {pipeline_mode = #tpu.pipeline_mode<synchronous>, transform_indices = @transform_7, window_bounds = array<i64: 1, 128>}, {pipeline_mode = #tpu.pipeline_mode<synchronous>, transform_indices = @transform_8, window_bounds = array<i64: 1, 32>}, {pipeline_mode = #tpu.pipeline_mode<synchronous>, transform_indices = @transform_9, window_bounds = array<i64: 2, 6>}, {transform_indices = @transform_10, window_bounds = array<i64: 8, 128>}, {pipeline_mode = #tpu.pipeline_mode<synchronous>, transform_indices = @transform_11, window_bounds = array<i64: 1, 128>}]} {
    %c0_i32 = arith.constant 0 : i32
    %0 = arith.cmpi eq, %arg0, %c0_i32 : i32
    %1 = arith.extui %0 : i1 to i32
    %c0_i32_0 = arith.constant 0 : i32
    %2 = arith.cmpi ne, %1, %c0_i32_0 : i32
    scf.if %2 {
      %cst_48 = arith.constant 0.000000e+00 : f32
      %c0_49 = arith.constant 0 : index
      %114 = memref.load %arg13[%c0_49] : memref<3xf32, #tpu.memory_space<smem>>
      memref.store %cst_48, %arg13[%c0_49] : memref<3xf32, #tpu.memory_space<smem>>
      %cst_50 = arith.constant 0.000000e+00 : f32
      %c1_51 = arith.constant 1 : index
      %115 = memref.load %arg13[%c1_51] : memref<3xf32, #tpu.memory_space<smem>>
      memref.store %cst_50, %arg13[%c1_51] : memref<3xf32, #tpu.memory_space<smem>>
      %cst_52 = arith.constant 0.000000e+00 : f32
      %c2_53 = arith.constant 2 : index
      %116 = memref.load %arg13[%c2_53] : memref<3xf32, #tpu.memory_space<smem>>
      memref.store %cst_52, %arg13[%c2_53] : memref<3xf32, #tpu.memory_space<smem>>
    } else {
    }
    %c0 = arith.constant 0 : index
    %c0_1 = arith.constant 0 : index
    %3 = vector.load %arg2[%c0, %c0_1] : memref<8x32xf32, #tpu.memory_space<vmem>>, vector<8x32xf32>
    %c0_2 = arith.constant 0 : index
    %c0_3 = arith.constant 0 : index
    %4 = vector.load %arg7[%c0_2, %c0_3] : memref<32x128xf32, #tpu.memory_space<vmem>>, vector<32x128xf32>
    %cst = arith.constant dense<0.000000e+00> : vector<8x128xf32>
    %5 = tpu.matmul %3, %4, %cst {dimension_numbers = #tpu.dot_dimension_numbers<[1], [0], [0], [1], [0, 0, 1, 1], [], []>} : vector<8x32xf32>, vector<32x128xf32>, vector<8x128xf32> -> vector<8x128xf32>
    %c0_4 = arith.constant 0 : index
    %c0_5 = arith.constant 0 : index
    %6 = vector.load %arg8[%c0_4, %c0_5] : memref<1x128xf32, #tpu.memory_space<vmem>>, vector<1x128xf32>
    %7 = vector.broadcast %6 : vector<1x128xf32> to vector<8x128xf32>
    %8 = arith.addf %5, %7 : vector<8x128xf32>
    %c0_6 = arith.constant 0 : index
    %c0_7 = arith.constant 0 : index
    %9 = vector.load %arg9[%c0_6, %c0_7] : memref<1x32xf32, #tpu.memory_space<vmem>>, vector<1x32xf32>
    %10 = vector.broadcast %9 : vector<1x32xf32> to vector<8x32xf32>
    %11 = arith.mulf %3, %10 : vector<8x32xf32>
    %cst_8 = arith.constant dense<0.000000e+00> : vector<8xf32>
    %12 = vector.multi_reduction <add>, %11, %cst_8 [1] : vector<8x32xf32> to vector<8xf32>
    %13 = vector.shape_cast %12 : vector<8xf32> to vector<8x1xf32>
    %14 = tpu.iota {dimensions = array<i32: 1>} : vector<8x6xi32>
    %c0_9 = arith.constant 0 : index
    %c0_10 = arith.constant 0 : index
    %15 = vector.load %arg3[%c0_9, %c0_10] : memref<8x2xi32, #tpu.memory_space<vmem>>, vector<8x1xi32>
    %16 = vector.broadcast %15 : vector<8x1xi32> to vector<8x6xi32>
    %17 = arith.cmpi eq, %14, %16 : vector<8x6xi32>
    %c0_11 = arith.constant 0 : index
    %c0_12 = arith.constant 0 : index
    %18 = vector.load %arg10[%c0_11, %c0_12] : memref<2x6xf32, #tpu.memory_space<vmem>>, vector<1x6xf32>
    %cst_13 = arith.constant 0.000000e+00 : f32
    %19 = vector.shape_cast %18 : vector<1x6xf32> to vector<1x6xf32>
    %20 = vector.broadcast %19 : vector<1x6xf32> to vector<8x6xf32>
    %21 = vector.broadcast %cst_13 : f32 to vector<8x6xf32>
    %22 = arith.select %17, %20, %21 : vector<8x6xi1>, vector<8x6xf32>
    %cst_14 = arith.constant dense<0.000000e+00> : vector<8xf32>
    %23 = vector.multi_reduction <add>, %22, %cst_14 [1] : vector<8x6xf32> to vector<8xf32>
    %24 = vector.shape_cast %23 : vector<8xf32> to vector<8x1xf32>
    %25 = arith.addf %13, %24 : vector<8x1xf32>
    %c0_15 = arith.constant 0 : index
    %c1 = arith.constant 1 : index
    %26 = vector.load %arg3[%c0_15, %c1] : memref<8x2xi32, #tpu.memory_space<vmem>>, vector<8x1xi32>
    %27 = vector.broadcast %26 : vector<8x1xi32> to vector<8x6xi32>
    %28 = arith.cmpi eq, %14, %27 : vector<8x6xi32>
    %c1_16 = arith.constant 1 : index
    %c0_17 = arith.constant 0 : index
    %29 = vector.load %arg10[%c1_16, %c0_17] : memref<2x6xf32, #tpu.memory_space<vmem>>, vector<1x6xf32>
    %cst_18 = arith.constant 0.000000e+00 : f32
    %30 = vector.shape_cast %29 : vector<1x6xf32> to vector<1x6xf32>
    %31 = vector.broadcast %30 : vector<1x6xf32> to vector<8x6xf32>
    %32 = vector.broadcast %cst_18 : f32 to vector<8x6xf32>
    %33 = arith.select %28, %31, %32 : vector<8x6xi1>, vector<8x6xf32>
    %cst_19 = arith.constant dense<0.000000e+00> : vector<8xf32>
    %34 = vector.multi_reduction <add>, %33, %cst_19 [1] : vector<8x6xf32> to vector<8xf32>
    %35 = vector.shape_cast %34 : vector<8xf32> to vector<8x1xf32>
    %36 = arith.addf %25, %35 : vector<8x1xf32>
    %c2 = arith.constant 2 : index
    %37 = memref.load %arg1[%c2] : memref<4xf32, #tpu.memory_space<smem>>
    %38 = vector.broadcast %37 : f32 to vector<8x1xf32>
    %39 = arith.addf %36, %38 : vector<8x1xf32>
    %40 = tpu.iota {dimensions = array<i32: 1>} : vector<8x128xi32>
    %c6_i32 = arith.constant 6 : i32
    %41 = vector.broadcast %c6_i32 : i32 to vector<8x128xi32>
    %42 = arith.cmpi slt, %40, %41 : vector<8x128xi32>
    %c6_i32_20 = arith.constant 6 : i32
    %43 = vector.broadcast %c6_i32_20 : i32 to vector<8x128xi32>
    %44 = arith.cmpi eq, %40, %43 : vector<8x128xi32>
    %cst_21 = arith.constant 0.000000e+00 : f32
    %45 = vector.shape_cast %39 : vector<8x1xf32> to vector<8x1xf32>
    %46 = vector.broadcast %45 : vector<8x1xf32> to vector<8x128xf32>
    %47 = vector.broadcast %cst_21 : f32 to vector<8x128xf32>
    %48 = arith.select %44, %46, %47 : vector<8x128xi1>, vector<8x128xf32>
    %49 = arith.addf %8, %48 : vector<8x128xf32>
    %c0_22 = arith.constant 0 : index
    %c0_23 = arith.constant 0 : index
    %50 = vector.load %arg11[%c0_22, %c0_23] : memref<8x128xf32, #tpu.memory_space<vmem>>, vector<8x128xf32>
    tpu.vector_store %arg11[%c0_22, %c0_23], %49 {strides = array<i32>} : memref<8x128xf32, #tpu.memory_space<vmem>>, vector<8x128xf32>,
    %cst_24 = arith.constant -1.000000e+30 : f32
    %51 = vector.broadcast %cst_24 : f32 to vector<8x128xf32>
    %52 = arith.select %42, %8, %51 : vector<8x128xi1>, vector<8x128xf32>
    %cst_25 = arith.constant dense<0xFF800000> : vector<8xf32>
    %53 = vector.multi_reduction <maximumf>, %52, %cst_25 [1] : vector<8x128xf32> to vector<8xf32>
    %54 = vector.shape_cast %53 : vector<8xf32> to vector<8x1xf32>
    %55 = vector.broadcast %54 : vector<8x1xf32> to vector<8x128xf32>
    %56 = arith.subf %52, %55 : vector<8x128xf32>
    %57 = math.exp %56 : vector<8x128xf32>
    %cst_26 = arith.constant 0.000000e+00 : f32
    %58 = vector.broadcast %cst_26 : f32 to vector<8x128xf32>
    %59 = arith.select %42, %57, %58 : vector<8x128xi1>, vector<8x128xf32>
    %cst_27 = arith.constant dense<0.000000e+00> : vector<8xf32>
    %60 = vector.multi_reduction <add>, %59, %cst_27 [1] : vector<8x128xf32> to vector<8xf32>
    %61 = vector.shape_cast %60 : vector<8xf32> to vector<8x1xf32>
    %62 = tpu.reciprocal %61 {approx = true} : vector<8x1xf32> -> vector<8x1xf32>
    %63 = vector.broadcast %62 : vector<8x1xf32> to vector<8x128xf32>
    %64 = arith.mulf %59, %63 : vector<8x128xf32>
    %65 = vector.broadcast %54 : vector<8x1xf32> to vector<8x128xf32>
    %66 = arith.subf %52, %65 : vector<8x128xf32>
    %67 = math.log %61 : vector<8x1xf32>
    %68 = vector.broadcast %67 : vector<8x1xf32> to vector<8x128xf32>
    %69 = arith.subf %66, %68 : vector<8x128xf32>
    %cst_28 = arith.constant 0.000000e+00 : f32
    %70 = vector.broadcast %cst_28 : f32 to vector<8x128xf32>
    %71 = arith.select %42, %69, %70 : vector<8x128xi1>, vector<8x128xf32>
    %c0_29 = arith.constant 0 : index
    %c0_30 = arith.constant 0 : index
    %72 = vector.load %arg4[%c0_29, %c0_30] : memref<8x1xi32, #tpu.memory_space<vmem>>, vector<8x1xi32>
    %73 = vector.broadcast %72 : vector<8x1xi32> to vector<8x128xi32>
    %74 = arith.cmpi eq, %40, %73 : vector<8x128xi32>
    %75 = arith.extui %74 : vector<8x128xi1> to vector<8x128xi32>
    %76 = arith.sitofp %75 : vector<8x128xi32> to vector<8x128xf32>
    %77 = arith.mulf %71, %76 : vector<8x128xf32>
    %cst_31 = arith.constant dense<0.000000e+00> : vector<8xf32>
    %78 = vector.multi_reduction <add>, %77, %cst_31 [1] : vector<8x128xf32> to vector<8xf32>
    %79 = vector.shape_cast %78 : vector<8xf32> to vector<8x1xf32>
    %80 = arith.mulf %64, %71 : vector<8x128xf32>
    %cst_32 = arith.constant dense<0.000000e+00> : vector<8xf32>
    %81 = vector.multi_reduction <add>, %80, %cst_32 [1] : vector<8x128xf32> to vector<8xf32>
    %82 = vector.shape_cast %81 : vector<8xf32> to vector<8x1xf32>
    %cst_33 = arith.constant 0.000000e+00 : f32
    %83 = vector.broadcast %cst_33 : f32 to vector<8x1xf32>
    %84 = arith.subf %83, %82 : vector<8x1xf32>
    %c0_34 = arith.constant 0 : index
    %85 = memref.load %arg13[%c0_34] : memref<3xf32, #tpu.memory_space<smem>>
    %c0_35 = arith.constant 0 : index
    %c0_36 = arith.constant 0 : index
    %86 = vector.load %arg5[%c0_35, %c0_36] : memref<8x1xf32, #tpu.memory_space<vmem>>, vector<8x1xf32>
    %87 = arith.mulf %79, %86 : vector<8x1xf32>
    %88 = vector.shape_cast %87 : vector<8x1xf32> to vector<1x8x1xf32>
    %cst_37 = arith.constant dense<0.000000e+00> : vector<1xf32>
    %89 = vector.multi_reduction <add>, %88, %cst_37 [1, 2] : vector<1x8x1xf32> to vector<1xf32>
    %90 = vector.shape_cast %89 : vector<1xf32> to vector<1x1x1xf32>
    %91 = vector.extract %90[0, 0, 0] : f32 from vector<1x1x1xf32>
    %92 = arith.addf %85, %91 : f32
    %c0_38 = arith.constant 0 : index
    %93 = memref.load %arg13[%c0_38] : memref<3xf32, #tpu.memory_space<smem>>
    memref.store %92, %arg13[%c0_38] : memref<3xf32, #tpu.memory_space<smem>>
    %c1_39 = arith.constant 1 : index
    %94 = memref.load %arg13[%c1_39] : memref<3xf32, #tpu.memory_space<smem>>
    %95 = vector.shape_cast %84 : vector<8x1xf32> to vector<1x8x1xf32>
    %cst_40 = arith.constant dense<0.000000e+00> : vector<1xf32>
    %96 = vector.multi_reduction <add>, %95, %cst_40 [1, 2] : vector<1x8x1xf32> to vector<1xf32>
    %97 = vector.shape_cast %96 : vector<1xf32> to vector<1x1x1xf32>
    %98 = vector.extract %97[0, 0, 0] : f32 from vector<1x1x1xf32>
    %99 = arith.addf %94, %98 : f32
    %c1_41 = arith.constant 1 : index
    %100 = memref.load %arg13[%c1_41] : memref<3xf32, #tpu.memory_space<smem>>
    memref.store %99, %arg13[%c1_41] : memref<3xf32, #tpu.memory_space<smem>>
    %c2_42 = arith.constant 2 : index
    %101 = memref.load %arg13[%c2_42] : memref<3xf32, #tpu.memory_space<smem>>
    %c0_43 = arith.constant 0 : index
    %c0_44 = arith.constant 0 : index
    %102 = vector.load %arg6[%c0_43, %c0_44] : memref<8x1xf32, #tpu.memory_space<vmem>>, vector<8x1xf32>
    %103 = arith.subf %102, %39 : vector<8x1xf32>
    %104 = arith.mulf %103, %103 : vector<8x1xf32>
    %105 = vector.shape_cast %104 : vector<8x1xf32> to vector<1x8x1xf32>
    %cst_45 = arith.constant dense<0.000000e+00> : vector<1xf32>
    %106 = vector.multi_reduction <add>, %105, %cst_45 [1, 2] : vector<1x8x1xf32> to vector<1xf32>
    %107 = vector.shape_cast %106 : vector<1xf32> to vector<1x1x1xf32>
    %108 = vector.extract %107[0, 0, 0] : f32 from vector<1x1x1xf32>
    %109 = arith.addf %101, %108 : f32
    %c2_46 = arith.constant 2 : index
    %110 = memref.load %arg13[%c2_46] : memref<3xf32, #tpu.memory_space<smem>>
    memref.store %109, %arg13[%c2_46] : memref<3xf32, #tpu.memory_space<smem>>
    %c1_i32 = arith.constant 1 : i32
    %111 = arith.cmpi eq, %arg0, %c1_i32 : i32
    %112 = arith.extui %111 : i1 to i32
    %c0_i32_47 = arith.constant 0 : i32
    %113 = arith.cmpi ne, %112, %c0_i32_47 : i32
    scf.if %113 {
      %c0_48 = arith.constant 0 : index
      %114 = memref.load %arg1[%c0_48] : memref<4xf32, #tpu.memory_space<smem>>
      %c1_49 = arith.constant 1 : index
      %115 = memref.load %arg1[%c1_49] : memref<4xf32, #tpu.memory_space<smem>>
      %c3 = arith.constant 3 : index
      %116 = memref.load %arg1[%c3] : memref<4xf32, #tpu.memory_space<smem>>
      %c0_50 = arith.constant 0 : index
      %117 = memref.load %arg13[%c0_50] : memref<3xf32, #tpu.memory_space<smem>>
      %cst_51 = arith.constant 0.000000e+00 : f32
      %118 = arith.subf %cst_51, %117 : f32
      %119 = arith.mulf %118, %116 : f32
      %c2_52 = arith.constant 2 : index
      %120 = memref.load %arg13[%c2_52] : memref<3xf32, #tpu.memory_space<smem>>
      %121 = arith.mulf %120, %116 : f32
      %122 = arith.mulf %121, %115 : f32
      %c1_53 = arith.constant 1 : index
      %123 = memref.load %arg13[%c1_53] : memref<3xf32, #tpu.memory_space<smem>>
      %cst_54 = arith.constant 0.000000e+00 : f32
      %124 = arith.subf %cst_54, %123 : f32
      %125 = arith.mulf %124, %116 : f32
      %126 = arith.mulf %125, %114 : f32
      %127 = tpu.iota {dimensions = array<i32: 1>} : vector<1x128xi32>
      %c0_i32_55 = arith.constant 0 : i32
      %128 = vector.broadcast %c0_i32_55 : i32 to vector<1x128xi32>
      %129 = arith.cmpi eq, %127, %128 : vector<1x128xi32>
      %c1_i32_56 = arith.constant 1 : i32
      %130 = vector.broadcast %c1_i32_56 : i32 to vector<1x128xi32>
      %131 = arith.cmpi eq, %127, %130 : vector<1x128xi32>
      %c2_i32 = arith.constant 2 : i32
      %132 = vector.broadcast %c2_i32 : i32 to vector<1x128xi32>
      %133 = arith.cmpi eq, %127, %132 : vector<1x128xi32>
      %cst_57 = arith.constant 0.000000e+00 : f32
      %134 = vector.broadcast %126 : f32 to vector<1x128xf32>
      %135 = vector.broadcast %cst_57 : f32 to vector<1x128xf32>
      %136 = arith.select %133, %134, %135 : vector<1x128xi1>, vector<1x128xf32>
      %137 = vector.broadcast %122 : f32 to vector<1x128xf32>
      %138 = arith.select %131, %137, %136 : vector<1x128xi1>, vector<1x128xf32>
      %139 = vector.broadcast %119 : f32 to vector<1x128xf32>
      %140 = arith.select %129, %139, %138 : vector<1x128xi1>, vector<1x128xf32>
      %c0_58 = arith.constant 0 : index
      %c0_59 = arith.constant 0 : index
      %141 = vector.load %arg12[%c0_58, %c0_59] : memref<1x128xf32, #tpu.memory_space<vmem>>, vector<1x128xf32>
      tpu.vector_store %arg12[%c0_58, %c0_59], %140 {strides = array<i32>} : memref<1x128xf32, #tpu.memory_space<vmem>>, vector<1x128xf32>,
    } else {
    }
    return
  }
  func.func @transform_0(%arg0: i32) -> i32 {
    %c0_i32 = arith.constant 0 : i32
    %c0_i32_0 = arith.constant 0 : i32
    return %c0_i32 : i32
  }
  func.func @transform_1(%arg0: i32) -> (i32, i32) {
    %c0_i32 = arith.constant 0 : i32
    %c0_i32_0 = arith.constant 0 : i32
    return %arg0, %c0_i32 : i32, i32
  }
  func.func @transform_2(%arg0: i32) -> (i32, i32) {
    %c0_i32 = arith.constant 0 : i32
    %c0_i32_0 = arith.constant 0 : i32
    return %arg0, %c0_i32 : i32, i32
  }
  func.func @transform_3(%arg0: i32) -> (i32, i32) {
    %c0_i32 = arith.constant 0 : i32
    %c0_i32_0 = arith.constant 0 : i32
    return %arg0, %c0_i32 : i32, i32
  }
  func.func @transform_4(%arg0: i32) -> (i32, i32) {
    %c0_i32 = arith.constant 0 : i32
    %c0_i32_0 = arith.constant 0 : i32
    return %arg0, %c0_i32 : i32, i32
  }
  func.func @transform_5(%arg0: i32) -> (i32, i32) {
    %c0_i32 = arith.constant 0 : i32
    %c0_i32_0 = arith.constant 0 : i32
    return %arg0, %c0_i32 : i32, i32
  }
  func.func @transform_6(%arg0: i32) -> (i32, i32) {
    %c0_i32 = arith.constant 0 : i32
    %c0_i32_0 = arith.constant 0 : i32
    %c0_i32_1 = arith.constant 0 : i32
    return %c0_i32, %c0_i32_0 : i32, i32
  }
  func.func @transform_7(%arg0: i32) -> (i32, i32) {
    %c0_i32 = arith.constant 0 : i32
    %c0_i32_0 = arith.constant 0 : i32
    %c0_i32_1 = arith.constant 0 : i32
    return %c0_i32, %c0_i32_0 : i32, i32
  }
  func.func @transform_8(%arg0: i32) -> (i32, i32) {
    %c0_i32 = arith.constant 0 : i32
    %c0_i32_0 = arith.constant 0 : i32
    %c0_i32_1 = arith.constant 0 : i32
    return %c0_i32, %c0_i32_0 : i32, i32
  }
  func.func @transform_9(%arg0: i32) -> (i32, i32) {
    %c0_i32 = arith.constant 0 : i32
    %c0_i32_0 = arith.constant 0 : i32
    %c0_i32_1 = arith.constant 0 : i32
    return %c0_i32, %c0_i32_0 : i32, i32
  }
  func.func @transform_10(%arg0: i32) -> (i32, i32) {
    %c0_i32 = arith.constant 0 : i32
    %c0_i32_0 = arith.constant 0 : i32
    return %arg0, %c0_i32 : i32, i32
  }
  func.func @transform_11(%arg0: i32) -> (i32, i32) {
    %c0_i32 = arith.constant 0 : i32
    %c0_i32_0 = arith.constant 0 : i32
    %c0_i32_1 = arith.constant 0 : i32
    return %c0_i32, %c0_i32_0 : i32, i32
  }
}

</mosaic_0001>

<bundles_post_ra>
// kernel: tpu_custom_call.1
= control target key start
LH: loop header
LB: loop body
LE: loop exit
PB: predicated region body
PF: predicated region fallthrough
CT: control target
= control target key end

     0   :  { %s1295_s0 = inlined_call_operand.vmem [shape: f32[4], index: 0, kind: input, shape index: {}]   ;;  %s1296_s1 = inlined_call_operand.vmem [shape: f32[16,32], index: 1, kind: input, shape index: {}]   ;;  %s1297_s2 = inlined_call_operand.vmem [shape: s32[16,2], index: 2, kind: input, shape index: {}]   ;;  %s1298_s3 = inlined_call_operand.vmem [shape: s32[16,1], index: 3, kind: input, shape index: {}]   ;;  %s1299_s4 = inlined_call_operand.vmem [shape: f32[16,1], index: 4, kind: input, shape index: {}]   ;;  %s1300_s5 = inlined_call_operand.vmem [shape: f32[16,1], index: 5, kind: input, shape index: {}]   ;;  %s1301_s6 = inlined_call_operand.vmem [shape: f32[32,128], index: 6, kind: input, shape index: {}]   ;;  %s1302_s7 = inlined_call_operand.vmem [shape: f32[1,128], index: 7, kind: input, shape index: {}]   ;;  %s1303_s8 = inlined_call_operand.vmem [shape: f32[1,32], index: 8, kind: input, shape index: {}]   ;;  %s1304_s9 = inlined_call_operand.vmem [shape: f32[2,6], index: 9, kind: input, shape index: {}]   ;;  %s1305_s10 = inlined_call_operand.hbm [shape: f32[16,128], index: 10, kind: output, shape index: {0}]   ;;  %s1306_s11 = inlined_call_operand.hbm [shape: f32[1,128], index: 11, kind: output, shape index: {1}]  }
   0x1   :  { %1309 = sst [smem:[#allocation12_spill]] %s1295_s0 }
   0x2   :  { %1310 = sst [smem:[#allocation13_spill]] %s1296_s1 }
   0x3   :  { %1311 = sst [smem:[#allocation14_spill]] %s1297_s2 }
   0x4   :  { %1312 = sst [smem:[#allocation15_spill]] %s1298_s3 }
   0x5   :  { %1313 = sst [smem:[#allocation16_spill]] %s1299_s4 }
   0x6   :  { %1314 = sst [smem:[#allocation17_spill]] %s1300_s5 }
   0x7   :  { %1315 = sst [smem:[#allocation18_spill]] %s1301_s6 }
   0x8   :  { %1316 = sst [smem:[#allocation19_spill]] %s1302_s7 }
   0x9   :  { %1317 = sst [smem:[#allocation20_spill]] %s1303_s8 }
   0xa   :  { %17 = vsyncpa [#allocation5], 0 }
   0xb   :  { %18 = vsyncpa [#allocation4], 0 }
   0xc   :  { %20 = vsyncpa [#allocation4 + $0x1], 0 }
   0xd   :  { %21 = vsyncpa [#allocation8], 0  ;;  %s1107_s17 = smov 0   ;;  %s1109_s18 = smov 0  }
   0xe   :  { %s1111_s19 = smov 0   ;;  %s1113_s20 = smov 0  }
   0xf LB: > { %s1128_s21 = sadd.s32 4294967295, %s1039_s20   ;;  %s811_s22 = sadd.s32 4294967294, %s1039_s20   ;;  %s1039_s20 = sphi %s1113_s20, %s1334_s20   ;;  %s1035_s19 = sphi %s1111_s19, %s1333_s19   ;;  %s1031_s18 = sphi %s1109_s18, %s1332_s18   ;;  %s1027_s17 = sphi %s1107_s17, %s1331_s17  }
  0x10   : > { %s1132_s23 = sadd.s32 1, %s1039_s20   ;;  %s269_s24 = sadd.s32 1, %s1035_s19 }
  0x11   : > { %s266_s25 = ssub.s32 %s1039_s20, %s1132_s23  ;;  %p279_p0 = scmp.ne.s32.totalorder %s1035_s19, %s1031_s18 }
  0x12   : > { %p267_p1 = scmp.eq.s32.totalorder %s266_s25, 0  ;;  %p280_p2 = scmp.eq.s32.totalorder %s1128_s21, 1 }
  0x13   : > { %p285_p3 = scmp.ne.s32.totalorder %s1031_s18, %s1027_s17  ;;  %p286_p4 = scmp.eq.s32.totalorder %s811_s22, 1 }
  0x14   : > { %s1143_s26 = scalar_select %p267_p1, %s1035_s19, %s269_s24  }
  0x15   : > { %p1147_p5 = por %p280_p2, %p279_p0  ;;  %p1151_p6 = por %p286_p4, %p285_p3 }
  0x16   : > { %p812_p7 = scmp.ge.s32.totalorder %s1039_s20, 1  ;;  %p314_p8 = scmp.lt.s32.totalorder %s1039_s20, 3 }
  0x17   : > { %p868_p9 = scmp.eq.s32.totalorder %s1128_s21, 0  ;;  %s1320_s0 = sld [smem:[#allocation12_spill]] }
  0x18   : > { %p315_p10 = pnand %p812_p7, %p314_p8  ;;  %s1041_s13 = smov [#allocation3]  }
  0x1a   : > { %p860_p11 = pneg %p315_p10  ;;  %386 = sbr.rel (%p315_p10) target bundleno = 782 (0x30e), region = 60 }
  0x1c   : > { %p861_p12 = pnand %p868_p9, %p860_p11 }
  0x1d   : > { %s326_s12 = sshll.u32 %s1320_s0, 4  ;;  %s327_s12 = int_to_ptr.vmem [resolvable:$true] %s326_s12 }
  0x1e   : > { %863 = dma.vmem_to_smem (!%p861_p12), %s327_s12, 16, %s1041_s13, [#allocation5]  }
  0x1f   : > { %1014 = dma.done.wait (%p868_p9), [#allocation5], 16  }
  0x20   : > { %1016 = vsyncadd (%p868_p9), [#allocation5], 4294967280 }
  0x21   : > { %393 = sfence }
  0x22   : > { %s1321_s6 = sld [smem:[#allocation18_spill]]  ;;  %p443_p13 = scmp.lt.s32.totalorder %s1128_s21, 1  ;;  %vm482_vm0 = vcmask 261120   ;;  %v1042_v7 = vmov 0   ;;  %v1043_v8 = vmov 1   ;;  %v514_v9 = vlaneseq }
  0x23   : > { %s1322_s1 = sld [smem:[#allocation13_spill]]  ;;  %912 = vset.pattern.permute.xlu1 %v1042_v7  ;;  %914 = vset.pattern.permute.xlu2 %v1042_v7  ;;  %v919_v20 = vld [vmem:[%s1304_s9 + $0x1] ss:$0 sm:$0xff]  ;;  %vm524_vm3 = vcmask 48128   ;;  %v918_v27 = vld [vmem:[%s1304_s9] ss:$0 sm:$0xff] }
  0x24   : > { %s444_s29 = scalar_select %p443_p13, %s1128_s21, 1  ;;  %915 = vset.pattern.permute.xlu0 %v1042_v7  ;;  %v1196_v10 = vand.u32 127, %v514_v9  ;;  %v1044_v40 = vmov 0.0   ;;  %vm580_vm7 = vcmask 7168  }
  0x25   : > { %s1323_s2 = sld [smem:[#allocation14_spill]]  ;;  %s1307_s14 = sand.u32 1, %s1031_s18  }
  0x26   : > { %s1181_s13 = sshll.u32 %s444_s29, 3  ;;  %s1324_s3 = sld [smem:[#allocation15_spill]]  ;;  %vm543_vm1 = vcmp.lt.s32.totalorder %v1196_v10, 6  ;;  %vm544_vm6 = vcmp.eq.s32.totalorder %v1196_v10, 6 }
  0x27   : > { %s1325_s7 = sld [smem:[#allocation19_spill]]  ;;  %s1227_s24 = sshll.u32 %s1307_s14, 3 }
  0x28   : > { %v477_v0 = vld [vmem:[%s1321_s6 + $0x18] sm:$0xff]  ;;  %v476_v1 = vld [vmem:[%s1321_s6 + $0x10] sm:$0xff]  ;;  %v475_v2 = vld [vmem:[%s1321_s6 + $0x8] sm:$0xff]  ;;  %s1326_s8 = sld [smem:[#allocation20_spill]]  ;;  %s1045_s15 = smov 0.0  }
  0x29   : > { %498 = vmatpush.msra.mxu0 %v477_v0  ;;  %v474_v3 = vld [vmem:[%s1321_s6] sm:$0xff]  ;;  %s446_s16 = scalar_lea.vmem %s1322_s1, %s1181_s13  ;;  %s1327_s5 = sld [smem:[#allocation17_spill]] }
  0x2a   : > { %v473_v4 = vld [vmem:[%s446_s16] sm:$0xff]  ;;  %s1328_s4 = sld [smem:[#allocation16_spill]]  ;;  %p829_p0 = scmp.ne.s32.totalorder %s1128_s21, 1 }
  0x2b   : > { %499 = vmatpush.msra.mxu0 %v476_v1  ;;  %s450_s25 = scalar_lea.vmem %s1323_s2, %s1181_s13  ;;  %851 = sst [smem:[#allocation2]] (%p868_p9), %s1045_s15 }
  0x2c   : > { %s454_s12 = scalar_lea.vmem %s1324_s3, %s1181_s13  ;;  %v516_v5 = vld [vmem:[%s450_s25] sm:$0xff]  ;;  %s1308_s25 = scalar_lea.vmem [#allocation6], %s1227_s24 }
  0x2d   : > { %500 = vmatpush.msra.mxu0 %v475_v2  ;;  %v563_v6 = vld [vmem:[%s454_s12] sm:$0xff]  ;;  %518 = vperm.xlu1 %912, %v516_v5   ;;  %s825_s12 = sld [smem:[#allocation3 + $0x2]] }
  0x2e   : > { %565 = vperm.xlu2 %914, %v563_v6   ;;  %v916_v11 = vld [vmem:[%s1325_s7] ss:$0 sm:$0xff]  ;;  %852 = sst [smem:[#allocation2 + $0x1]] (%p868_p9), %s1045_s15 }
  0x2f   : > { %501 = vmatpush.msra.mxu0 %v474_v3  ;;  %v917_v16 = vld [vmem:[%s1326_s8] ss:$0 sm:$0xff]  ;;  %s462_s22 = scalar_lea.vmem %s1327_s5, %s1181_s13  ;;  %853 = sst [smem:[#allocation2 + $0x2]] (%p868_p9), %s1045_s15 }
  0x30   : > { %824 = vmatmul.msk.f32.vlgmr.msra.gmra.mxu0 %vm482_vm0, %v473_v4  ;;  %v510_v18 = vmul.f32 %v917_v16, %v473_v4  ;;  %v609_v44 = vld [vmem:[%s462_s22] sm:$0xff]  ;;  %s827_s22 = sld [smem:[#allocation2 + $0x1]] }
  0x31   : > { %s828_s29 = sld [smem:[#allocation2 + $0x2]] }
  0x32   : > { %v511_v19 = vsel %vm482_vm0, %v510_v18, 0.0  ;;  %s830_s0 = sld [smem:[#allocation3 + $0x1]] (!%p829_p0) }
  0x33   : > { %v541_v39 = vstv %s825_s12  ;;  %s458_s12 = scalar_lea.vmem %s1328_s4, %s1181_s13  ;;  %s577_s13 = sld [smem:[#allocation2]] }
  0x34   : > { %v578_v56 = vld [vmem:[%s458_s12] sm:$0xff]  ;;  %s831_s1 = sld [smem:[#allocation3 + $0x3]] (!%p829_p0) }
  0x35   : > { %913 = vset.pattern.permute.xlu1 %v1043_v8  ;;  %s629_s5 = sld [smem:[#allocation3]] (!%p829_p0) }
  0x36   : > { %530 = vperm.xlu1 %913, %v516_v5  }
  0x57   : > { %512 = vadd.xlane.f32.xlu2 %v511_v19 }
  0x88   : > { %v566_v31 = vpop.permute.xlu2 %565 }
  0x89   : > { %vm567_vm5 = vcmp.eq.s32.totalorder %v1196_v10, %v566_v31 }
  0x8a   : > { %v826_v41 = vsel %vm567_vm5, 1.0, %v1044_v40 }
  0x9f   : > { %v519_v15 = vpop.permute.xlu1 %518 }
  0xa0   : > { %vm520_vm4 = vcmp.eq.s32.totalorder %v1196_v10, %v519_v15 }
  0xa1   : > { %v523_v29 = vsel %vm520_vm4, %v918_v27, 0.0 }
  0xa2   : > { %v525_v30 = vsel %vm524_vm3, %v523_v29, 0.0 }
  0xa8   : > { %v531_v17 = vpop.permute.xlu1 %530 }
  0xa9   : > { %vm532_vm2 = vcmp.eq.s32.totalorder %v1196_v10, %v531_v17 }
  0xaa   : > { %v535_v21 = vsel %vm532_vm2, %v919_v20, 0.0 }
  0xab   : > { %v536_v22 = vsel %vm524_vm3, %v535_v21, 0.0 }
  0xac   : > { %537 = vadd.xlane.f32.xlu1 %v536_v22 }
  0xad   : > { %v503_v12 = vpop.f32.mrf.mxu0 }
  0xae   : > { %v504_v13 = vadd.f32 %v916_v11, %v503_v12 }
  0xb0   : > { %v548_v14 = vsel %vm543_vm1, %v504_v13, -1e+30 }
  0xb1   : > { %549 = vmax.xlane.f32.xlu0 %v548_v14 }
  0xca   : > { %v513_v33 = vpop.xlane.xlu2 %512 }
 0x11f   : > { %v538_v36 = vpop.xlane.xlu1 %537 }
 0x124   : > { %v550_v23 = vpop.xlane.xlu0 %549 }
 0x125   : > { %v551_v24 = vsub.f32 %v548_v14, %v550_v23 }
 0x127   : > { %v552_v25 = vmul.f32 1.442695, %v551_v24 }
 0x129   : > { %920 = vpow2.f32 %v552_v25 }
 0x12f   : > { %v921_v26 = vpop.eup %920 }
 0x130   : > { %v554_v28 = vsel %vm543_vm1, %v921_v26, 0.0 }
 0x131   : > { %555 = vadd.xlane.f32.xlu0 %v554_v28 }
 0x139   : > { %526 = vadd.xlane.f32.xlu0 %v525_v30 }
 0x1a4   : > { %v556_v32 = vpop.xlane.xlu0 %555 }
 0x1a5   : > { %922 = vlog2.f32 %v556_v32 }
 0x1a6   : > { %924 = vrcp.f32 %v556_v32 }
 0x1ab   : > { %v923_v34 = vpop.eup %922 }
 0x1ac   : > { %v527_v35 = vpop.xlane.xlu0 %526  ;;  %v560_v37 = vmul.f32 0.6931472, %v923_v34  ;;  %v925_v51 = vpop.eup %924 }
 0x1ad   : > { %v528_v38 = vadd.f32 %v527_v35, %v513_v33  ;;  %v558_v54 = vmul.f32 %v925_v51, %v554_v28 }
 0x1ae   : > { %v561_v43 = vsub.f32 %v551_v24, %v560_v37 }
 0x1af   : > { %v539_v42 = vadd.f32 %v538_v36, %v528_v38 }
 0x1b0   : > { %v562_v46 = vsel %vm543_vm1, %v561_v43, 0.0 }
 0x1b1   : > { %v542_v45 = vadd.f32 %v541_v39, %v539_v42  ;;  %v570_v47 = vmul.f32 %v826_v41, %v562_v46  ;;  %v573_v55 = vmul.f32 %v562_v46, %v558_v54 }
 0x1b3   : > { %v545_v48 = vsel %vm544_vm6, %v542_v45, 0.0  ;;  %v610_v49 = vsub.f32 %v609_v44, %v542_v45  ;;  %571 = vadd.xlane.f32.xlu0 %v570_v47 }
 0x1b4   : > { %v546_v50 = vadd.f32 %v545_v48, %v504_v13 }
 0x1b5   : > { %v611_v52 = vmul.f32 %v610_v49, %v610_v49 }
 0x1b6   : > { %547 = vst [vmem:[%s1308_s25] sm:$0xff] %v546_v50 }
 0x1b7   : > { %v612_v53 = vsel %vm580_vm7, %v611_v52, 0.0 }
 0x1b8   : > { %613 = vadd.xlane.f32.xlu2 %v612_v53 }
 0x1bb   : > { %574 = vadd.xlane.f32.xlu0 %v573_v55 }
 0x226   : > { %v572_v57 = vpop.xlane.xlu0 %571 }
 0x227   : > { %v579_v58 = vmul.f32 %v578_v56, %v572_v57 }
 0x229   : > { %v581_v59 = vsel %vm580_vm7, %v579_v58, 0.0 }
 0x22a   : > { %582 = vadd.xlane.f32.xlu0 %v581_v59 }
 0x22b   : > { %v614_v63 = vpop.xlane.xlu2 %613 }
 0x22c   : > { %v615_v0 = vrot.slane %v614_v63, 4 }
 0x22e   : > { %v575_v60 = vpop.xlane.xlu0 %574  ;;  %v616_v4 = vadd.f32 %v615_v0, %v614_v63 }
 0x22f   : > { %v576_v61 = vsub.f32 0.0, %v575_v60 }
 0x230   : > { %v617_v7 = vrot.slane %v616_v4, 2 }
 0x231   : > { %v595_v62 = vsel %vm580_vm7, %v576_v61, 0.0 }
 0x232   : > { %596 = vadd.xlane.f32.xlu0 %v595_v62  ;;  %v618_v14 = vadd.f32 %v617_v7, %v616_v4 }
 0x234   : > { %v619_v17 = vrot.slane %v618_v14, 1 }
 0x236   : > { %v620_v20 = vadd.f32 %v619_v17, %v618_v14 }
 0x29d   : > { %v583_v1 = vpop.xlane.xlu0 %582 }
 0x29e   : > { %v584_v2 = vrot.slane %v583_v1, 4 }
 0x2a0   : > { %v585_v3 = vadd.f32 %v584_v2, %v583_v1 }
 0x2a2   : > { %v586_v5 = vrot.slane %v585_v3, 2 }
 0x2a4   : > { %v587_v6 = vadd.f32 %v586_v5, %v585_v3 }
 0x2a5   : > { %v597_v8 = vpop.xlane.xlu0 %596 }
 0x2a6   : > { %v598_v9 = vrot.slane %v597_v8, 4  ;;  %v588_v11 = vrot.slane %v587_v6, 1 }
 0x2a8   : > { %v599_v12 = vadd.f32 %v598_v9, %v597_v8  ;;  %v589_v13 = vadd.f32 %v588_v11, %v587_v6 }
 0x2aa   : > { %v600_v15 = vrot.slane %v599_v12, 2  ;;  %840 = vpush %v589_v13 }
 0x2ac   : > { %v601_v16 = vadd.f32 %v600_v15, %v599_v12 }
 0x2ae   : > { %v602_v18 = vrot.slane %v601_v16, 1 }
 0x2b0   : > { %v603_v19 = vadd.f32 %v602_v18, %v601_v16 }
 0x2b2   : > { %842 = vpush %v603_v19 }
 0x2b3   : > { %844 = vpush %v620_v20 }
 0x2db   : > { %s841_s16 = spop %840 }
 0x2dc   : > { %s591_s30 = sadd.f32 %s841_s16, %s577_s13 }
 0x2de   : > { %593 = sst [smem:[#allocation2]] %s591_s30 }
 0x2df   : > { %s632_s2 = sld [smem:[#allocation2]] (!%p829_p0) }
 0x2e3   : > { %s843_s12 = spop %842  ;;  %628 = sbr.rel (%p829_p0) target bundleno = 762 (0x2fa), region = 72 }
 0x2e4   : > { %s605_s15 = sadd.f32 %s843_s12, %s827_s22  ;;  %s845_s14 = spop %844 }
 0x2e5   : > { %s622_s25 = sadd.f32 %s845_s14, %s828_s29 }
 0x2e6   : > { %607 = sst [smem:[#allocation2 + $0x1]] %s605_s15 }
 0x2e7   : > { %624 = sst [smem:[#allocation2 + $0x2]] %s622_s25 }
 0x2e8   : > { %s832_s3 = sld [smem:[#allocation2 + $0x2]]  ;;  %vm644_vm8 = vcmp.eq.s32.totalorder %v1196_v10, 2  ;;  %vm643_vm9 = vcmp.eq.s32.totalorder %v1196_v10, 1  ;;  %vm642_vm10 = vcmp.eq.s32.totalorder %v1196_v10, 0 }
 0x2e9   : > { %s833_s4 = sld [smem:[#allocation2 + $0x1]] }
 0x2ea   : > { %s633_s6 = ssub.f32 0.0, %s632_s2 }
 0x2ec   : > { %s634_s13 = smul.f32 %s831_s1, %s633_s6 }
 0x2ee   : > { %s636_s7 = smul.f32 %s832_s3, %s831_s1  ;;  %v649_v23 = vstv %s634_s13 }
 0x2ef   : > { %s639_s16 = ssub.f32 0.0, %s833_s4 }
 0x2f0   : > { %s637_s30 = smul.f32 %s830_s0, %s636_s7 }
 0x2f1   : > { %s640_s8 = smul.f32 %s831_s1, %s639_s16 }
 0x2f2   : > { %v647_v21 = vstv %s637_s30 }
 0x2f3   : > { %s641_s22 = smul.f32 %s640_s8, %s629_s5 }
 0x2f5   : > { %v645_v22 = vstv %s641_s22 }
 0x2f6   : > { %v646_v24 = vsel %vm644_vm8, %v645_v22, 0.0 }
 0x2f7   : > { %v648_v25 = vsel %vm643_vm9, %v647_v21, %v646_v24 }
 0x2f8   : > { %v650_v26 = vsel %vm642_vm10, %v649_v23, %v648_v25 }
 0x2f9   : > { %651 = vst [vmem:[#allocation7] sm:$0x1] %v650_v26 }
 0x2fa PF: > { %s835_s0 = sshll.u32 %s1128_s21, 3  ;;  %s1329_s4 = scalar_lea.vmem [#allocation6], %s1227_s24 }
 0x2fb   : > { %s663_s3 = scalar_lea.hbm %s1305_s10, %s835_s0  ;;  %s665_s5 = sshll.u32 %s1329_s4, 4  ;;  %s666_s5 = int_to_ptr.vmem [resolvable:$true] %s665_s5 }
 0x2fc   : > { %s667_s6 = sshll.u32 %s663_s3, 4  ;;  %s1330_s7 = sand.u32 1, %s1031_s18   ;;  %s668_s6 = int_to_ptr.hbm [resolvable:$true] %s667_s6 }
 0x2fd   : > { %s653_s8 = scalar_lea.sflag [#allocation4], %s1330_s7  ;;  %s955_s14 = sshra.s32 %s668_s6, 4  ;;  %s956_s14 = int_to_ptr.hbm [resolvable:$true] %s955_s14 }
 0x2fe   : > { %s957_s25 = scalar_lea.hbm %s956_s14, 8  ;;  %s961_s15 = scalar_lea.hbm %s1305_s10, 16 }
 0x2ff   : > { %p958_p1 = scmp.ne.s32.totalorder %s956_s14, %s957_s25  ;;  %p962_p7 = scmp.lt.s32.totalorder %s956_s14, %s1305_s10 }
 0x300   : > { %p963_p8 = scmp.lt.s32.totalorder %s961_s15, %s957_s25 }
 0x301   : > { %p959_p3 = pnand %p958_p1, %p1147_p5 }
 0x302   : > { %p964_p9 = por %p963_p8, %p962_p7 }
 0x303   : > { %p960_p4 = pneg %p959_p3 }
 0x305   : > { %p965_p10 = pnand %p964_p9, %p960_p4 }
 0x307   : > { %968 = shalt.err (!%p965_p10)
}
 0x308   : > { %854 = dma.vmem_to_hbm [thread:$0]  (%p1147_p5), %s666_s5, 128, %s668_s6, %s653_s8  }
 0x309   : > { %s1046_s24 = smov [#allocation7]   ;;  %s679_s1 = sshll.u32 %s1306_s11, 4  ;;  %s680_s1 = int_to_ptr.hbm [resolvable:$true] %s679_s1 }
 0x30a   : > { %s677_s30 = sshll.u32 %s1046_s24, 4  ;;  %s678_s30 = int_to_ptr.vmem [resolvable:$true] %s677_s30 }
 0x30b   : > { %856 = dma.vmem_to_hbm [thread:$0]  (%p280_p2), %s678_s30, 16, %s680_s1, [#allocation8]  }
 0x30c   : > { %1018 = dma.done.wait (%p280_p2), [#allocation8], 16  }
 0x30d   : > { %1020 = vsyncadd (%p280_p2), [#allocation8], 4294967280 }
 0x30e PF: > { %p873_p5 = scmp.ge.s32.totalorder %s1039_s20, 2  ;;  %s696_s27 = sand.u32 1, %s1027_s17  }
 0x30f   : > { %s697_s2 = scalar_lea.sflag [#allocation4], %s696_s27 }
 0x310   : > { %p865_p11 = pnand %p873_p5, %p1151_p6 }
 0x312   : > { %p866_p12 = pneg %p865_p11 }
 0x314   : > { %1022 = dma.done.wait (%p866_p12), %s697_s2, 128  }
 0x315   : > { %1024 = vsyncadd (%p866_p12), %s697_s2, 4294967168  ;;  %p24_p13 = scmp.ge.s32.totalorder %s1132_s23, 4   ;;  %s1331_s17 = smov %s1031_s18 }
 0x316   : > { %s1332_s18 = smov %s1035_s19  ;;  %s1333_s19 = smov %s1143_s26 }
 0x317   : > { %s1334_s20 = smov %s1132_s23  ;;  %26 = sbr.rel (!%p24_p13) target bundleno = 15 (0xf), region = 134 }
 0x31c   :  { %703 = vsyncpa [#allocation4], 1 }
 0x31d   :  { %705 = vsyncpa [#allocation4 + $0x1], 1 }
 0x31e   :  { %706 = vsyncpa [#allocation8], 1 }
 0x31f   :  { %707 = vsyncpa [#allocation5], 1 }
 0x320   :  { %709 = vsyncpa [#allocation5 + $0x1], 1 }

</bundles_post_ra>
